<compile_context>
chip_gen: v7x
topology: tpu7x:2x2x1
jax: 0.10.0
libtpu: 0.0.40
codegen_flags: <defaults>
</compile_context>

<pallas_src>
import functools

import jax
import jax.numpy as jnp
from jax.experimental import pallas as pl
from jax.experimental.pallas import tpu as pltpu


# ------------------------------ small helpers ------------------------------

def _round_up(x, m):
    return (x + m - 1) // m * m


def _pad_to(arr, shape):
    pads = [(0, t - s) for s, t in zip(arr.shape, shape)]
    if all(p == (0, 0) for p in pads):
        return arr
    return jnp.pad(arr, pads)


def _choose_tile(dim, align, max_tile):
    """Pick a tile (multiple of `align`, <= max_tile) minimising total padding
    of `dim`; ties prefer the larger tile.  Returns (tile, padded_dim)."""
    dp = _round_up(dim, align)
    if dp <= max_tile:
        return dp, dp
    best_t, best_total = None, None
    t = max_tile
    while t >= align:
        total = _round_up(dp, t)
        if best_total is None or total < best_total:
            best_t, best_total = t, total
        t -= align
    return best_t, best_total


@functools.lru_cache(maxsize=None)
def _vmem_limit_bytes():
    # Derive the scoped-VMEM budget from the hardware (v7x has only 64 MiB of
    # physical VMEM per TensorCore); leave ~25% headroom, cap at 64 MiB.
    cap = 64 * 1024 * 1024
    try:
        cap = int(getattr(pltpu.get_tpu_info(), "vmem_capacity_bytes", cap))
    except Exception:
        pass
    return min(64 * 1024 * 1024, (cap * 3) // 4)


# --------------------------- tiled matmul kernel ----------------------------

def _matmul_bias_kernel(x_ref, w_ref, b_ref, o_ref, acc_ref, *, relu):
    @pl.when(pl.program_id(2) == 0)
    def _():
        acc_ref[...] = jnp.zeros_like(acc_ref)

    acc_ref[...] += jnp.dot(x_ref[...], w_ref[...],
                            preferred_element_type=jnp.float32)

    @pl.when(pl.program_id(2) == pl.num_programs(2) - 1)
    def _():
        out = acc_ref[...] + b_ref[...].astype(jnp.float32)
        if relu:
            out = jnp.maximum(out, 0.0)
        o_ref[...] = out.astype(o_ref.dtype)


def matmul_bias(x, w, b, relu=False):
    """x:(M,K) @ w:(K,N) + b:(1,N)  (optional ReLU), tiled over (M, N, K)."""
    M, K = x.shape
    N = w.shape[1]

    tm, Mp = _choose_tile(M, 8, 512)       # sublane axis
    tk, Kp = _choose_tile(K, 128, 1024)    # contraction axis (no over-pad)
    tn, Np = _choose_tile(N, 128, 512)     # lane-dense output stores

    xp = _pad_to(x, (Mp, Kp))
    wp = _pad_to(w, (Kp, Np))
    bp = _pad_to(b, (1, Np))

    out = pl.pallas_call(
        functools.partial(_matmul_bias_kernel, relu=relu),
        out_shape=jax.ShapeDtypeStruct((Mp, Np), x.dtype),
        grid=(Mp // tm, Np // tn, Kp // tk),
        in_specs=[
            pl.BlockSpec((tm, tk), lambda i, j, k: (i, k)),
            pl.BlockSpec((tk, tn), lambda i, j, k: (k, j)),
            pl.BlockSpec((1, tn), lambda i, j, k: (0, j)),
        ],
        out_specs=pl.BlockSpec((tm, tn), lambda i, j, k: (i, j)),
        scratch_shapes=[pltpu.VMEM((tm, tn), jnp.float32)],
        compiler_params=pltpu.CompilerParams(
            dimension_semantics=("parallel", "parallel", "arbitrary"),
            vmem_limit_bytes=_vmem_limit_bytes()),
    )(xp, wp, bp)
    return out[:M, :N] if (Mp, Np) != (M, N) else out


# ------------- matmul fused with residual add + LayerNorm epilogue ----------

def _matmul_res_ln_kernel(x_ref, w_ref, b_ref, r_ref, g_ref, be_ref,
                          o_ref, acc_ref, *, eps):
    @pl.when(pl.program_id(1) == 0)
    def _():
        acc_ref[...] = jnp.zeros_like(acc_ref)

    acc_ref[...] += jnp.dot(x_ref[...], w_ref[...],
                            preferred_element_type=jnp.float32)

    @pl.when(pl.program_id(1) == pl.num_programs(1) - 1)
    def _():
        y = (acc_ref[...] + b_ref[...].astype(jnp.float32)
             + r_ref[...].astype(jnp.float32))
        mean = jnp.mean(y, axis=-1, keepdims=True)
        var = jnp.mean(jnp.square(y - mean), axis=-1, keepdims=True)
        yn = (y - mean) * jax.lax.rsqrt(var + eps)
        o_ref[...] = (yn * g_ref[...].astype(jnp.float32)
                      + be_ref[...].astype(jnp.float32)).astype(o_ref.dtype)


def matmul_residual_layernorm(x, w, b, residual, gamma, beta, eps=1e-5):
    """LayerNorm((x @ w + b) + residual) * gamma + beta.

    The LN reduction runs over N (= emb_dim), so N is kept as one full,
    *unpadded* block (padding would corrupt mean/var); M and K are tiled.
    """
    M, K = x.shape
    N = w.shape[1]
    tm, Mp = _choose_tile(M, 8, 512)
    tk, Kp = _choose_tile(K, 128, 1024)

    xp = _pad_to(x, (Mp, Kp))
    wp = _pad_to(w, (Kp, N))
    rp = _pad_to(residual, (Mp, N))

    out = pl.pallas_call(
        functools.partial(_matmul_res_ln_kernel, eps=eps),
        out_shape=jax.ShapeDtypeStruct((Mp, N), x.dtype),
        grid=(Mp // tm, Kp // tk),
        in_specs=[
            pl.BlockSpec((tm, tk), lambda i, k: (i, k)),
            pl.BlockSpec((tk, N), lambda i, k: (k, 0)),
            pl.BlockSpec((1, N), lambda i, k: (0, 0)),
            pl.BlockSpec((tm, N), lambda i, k: (i, 0)),
            pl.BlockSpec((1, N), lambda i, k: (0, 0)),
            pl.BlockSpec((1, N), lambda i, k: (0, 0)),
        ],
        out_specs=pl.BlockSpec((tm, N), lambda i, k: (i, 0)),
        scratch_shapes=[pltpu.VMEM((tm, N), jnp.float32)],
        compiler_params=pltpu.CompilerParams(
            dimension_semantics=("parallel", "arbitrary"),
            vmem_limit_bytes=_vmem_limit_bytes()),
    )(xp, wp, b, rp, gamma, beta)
    return out[:M] if Mp != M else out


# ---------------- fused QKV-projection + multi-head attention ---------------

def _attention_kernel(x_ref, wq_ref, wk_ref, wv_ref, bq_ref, bk_ref, bv_ref,
                      o_ref, q_s, k_s, v_s, *, heads, head_dim, seq_len):
    x = x_ref[...]                                   # (Sp, E), bf16/f32

    # Project this head-group's Q/K/V once (f32 accumulate) and park the
    # results in VMEM scratch: per-head work below reads narrow Ref slices,
    # keeping vreg live ranges to (Sp, head_dim) instead of (Sp, 3E).
    q_s[...] = (jnp.dot(x, wq_ref[...], preferred_element_type=jnp.float32)
                + bq_ref[...].astype(jnp.float32)).astype(q_s.dtype)
    k_s[...] = (jnp.dot(x, wk_ref[...], preferred_element_type=jnp.float32)
                + bk_ref[...].astype(jnp.float32)).astype(k_s.dtype)
    v_s[...] = (jnp.dot(x, wv_ref[...], preferred_element_type=jnp.float32)
                + bv_ref[...].astype(jnp.float32)).astype(v_s.dtype)

    sp = x_ref.shape[0]
    # Mask padded key positions (columns >= seq_len) out of the softmax.
    col = jax.lax.broadcasted_iota(jnp.int32, (sp, sp), 1)
    valid = col < seq_len

    for h in range(heads):
        sl = pl.ds(h * head_dim, head_dim)
        q = q_s[:, sl]                               # (Sp, hd) — scale folded
        k = k_s[:, sl]                               # into wq at init time
        v = v_s[:, sl]
        s = jax.lax.dot_general(q, k, (((1,), (1,)), ((), ())),
                                preferred_element_type=jnp.float32)  # (Sp,Sp)
        s = jnp.where(valid, s, jnp.float32(-1e30))  # softmax math stays f32
        m = jnp.max(s, axis=-1, keepdims=True)
        p = jnp.exp(s - m)
        denom = jnp.sum(p, axis=-1, keepdims=True)
        o = jnp.dot(p.astype(v.dtype), v, preferred_element_type=jnp.float32)
        # Write each head's result straight into its lane slice of the output.
        o_ref[:, sl] = (o * pl.reciprocal(denom, approx=True)).astype(o_ref.dtype)


def _num_head_groups(num_heads, head_dim):
    # Second parallel grid axis so both v7x TensorCores are busy even at
    # per-chip batch 1, but only if each group's output slice stays lane-dense.
    if num_heads % 2 == 0 and ((num_heads // 2) * head_dim) % 128 == 0:
        return 2
    return 1


def attention(x, w_q, w_k, w_v, b_q, b_k, b_v, *, num_heads, seq_len):
    """x:(B,Sp,E); QKV projection fused with per-head softmax -> (B,Sp,E)."""
    B, Sp, E = x.shape
    hd = E // num_heads
    G = _num_head_groups(num_heads, hd)
    heads_per_group = num_heads // G
    gw = heads_per_group * hd                     # output lanes per group

    kernel = functools.partial(_attention_kernel, heads=heads_per_group,
                               head_dim=hd, seq_len=seq_len)
    return pl.pallas_call(
        kernel,
        out_shape=jax.ShapeDtypeStruct((B, Sp, E), x.dtype),
        # Head-group axis outermost: weight blocks have a constant index
        # across the batch steps, so they stay resident in VMEM (fetched once
        # per group) while only x / output are streamed.
        grid=(G, B),
        in_specs=[
            pl.BlockSpec((pl.Squeezed(), Sp, E), lambda g, b: (b, 0, 0)),
            pl.BlockSpec((E, gw), lambda g, b: (0, g)),
            pl.BlockSpec((E, gw), lambda g, b: (0, g)),
            pl.BlockSpec((E, gw), lambda g, b: (0, g)),
            pl.BlockSpec((1, gw), lambda g, b: (0, g)),
            pl.BlockSpec((1, gw), lambda g, b: (0, g)),
            pl.BlockSpec((1, gw), lambda g, b: (0, g)),
        ],
        out_specs=pl.BlockSpec((pl.Squeezed(), Sp, gw), lambda g, b: (b, 0, g)),
        scratch_shapes=[pltpu.VMEM((Sp, gw), x.dtype),
                        pltpu.VMEM((Sp, gw), x.dtype),
                        pltpu.VMEM((Sp, gw), x.dtype)],
        compiler_params=pltpu.CompilerParams(
            dimension_semantics=("parallel", "parallel"),
            vmem_limit_bytes=_vmem_limit_bytes()),
    )(x, w_q, w_k, w_v, b_q, b_k, b_v)


# ----------------------------- parameter init -------------------------------

def init_params(key, cfg, dtype=jnp.bfloat16):
    C = cfg["in_channels"]
    ps = cfg["patch_size"]
    E = cfg["emb_dim"]
    F = cfg["forward_expansion"] * E
    P = (cfg["img_size"] // ps) ** 2
    NC = cfg["num_classes"]
    hd = E // cfg["num_heads"]
    q_scale = 1.0 / (hd ** 0.5)   # softmax scale folded into the Q projection

    keys = iter(jax.random.split(key, 8 + 16 * cfg["num_layers"]))

    def w(shape, scale=0.02):
        return (scale * jax.random.normal(next(keys), shape)).astype(dtype)

    def zeros(shape):
        return jnp.zeros(shape, dtype)

    def ones(shape):
        return jnp.ones(shape, dtype)

    params = {
        # conv weight (E, C, ps, ps) flattened to (C*ps*ps, E): patch @ W == conv.
        "patch_w": w((C * ps * ps, E)),
        "patch_b": zeros((1, E)),
        "cls_token": w((1, 1, E), scale=1.0),
        "pos_emb": w((1, 1 + P, E), scale=1.0),
        "head_w": w((E, NC)),
        "head_b": zeros((1, NC)),
        "layers": [],
    }
    for _ in range(cfg["num_layers"]):
        params["layers"].append({
            # 1/sqrt(head_dim) is pre-multiplied into w_q (and would be into
            # b_q if it were nonzero) — removes a per-head VPU multiply.
            "w_q": w((E, E), scale=0.02 * q_scale), "b_q": zeros((1, E)),
            "w_k": w((E, E)), "b_k": zeros((1, E)),
            "w_v": w((E, E)), "b_v": zeros((1, E)),
            "wo": w((E, E)), "bo": zeros((1, E)),
            "ln1_g": ones((1, E)), "ln1_b": zeros((1, E)),
            "ln2_g": ones((1, E)), "ln2_b": zeros((1, E)),
            "w1": w((E, F)), "b1": zeros((1, F)),
            "w2": w((F, E)), "b2": zeros((1, E)),
        })
    return params


# ------------------------------ forward pass --------------------------------

def vit_forward(x, params, cfg):
    B, C, H, W = x.shape
    ps = cfg["patch_size"]
    E = cfg["emb_dim"]
    nh = cfg["num_heads"]
    Hp, Wp = H // ps, W // ps
    P = Hp * Wp
    S = P + 1
    Sp = _round_up(S, 8)            # pad sequence once for (8,128)-safe tiles

    dtype = params["patch_w"].dtype
    x = x.astype(dtype)

    # Patch embedding: strided conv == patch extraction (layout glue) + matmul.
    # TODO(synk): for large images fold the patch gather into the matmul via an
    # Element-based index_map instead of this host-side reshape/transpose.
    patches = x.reshape(B, C, Hp, ps, Wp, ps)
    patches = patches.transpose(0, 2, 4, 1, 3, 5).reshape(B * P, C * ps * ps)
    emb = matmul_bias(patches, params["patch_w"], params["patch_b"])
    emb = emb.reshape(B, P, E)

    cls = jnp.broadcast_to(params["cls_token"], (B, 1, E))
    seq = jnp.concatenate([cls, emb], axis=1) + params["pos_emb"]    # (B, S, E)
    seq = jnp.pad(seq, ((0, 0), (0, Sp - S), (0, 0)))                # (B, Sp, E)

    x2d = seq.reshape(B * Sp, E)                                     # lane-dense
    for lp in params["layers"]:
        # fused QKV projection + multi-head attention (no qkv HBM round trip)
        ao = attention(x2d.reshape(B, Sp, E),
                       lp["w_q"], lp["w_k"], lp["w_v"],
                       lp["b_q"], lp["b_k"], lp["b_v"],
                       num_heads=nh, seq_len=S)
        ao = ao.reshape(B * Sp, E)
        # out-projection fused with residual add + LayerNorm1
        x1 = matmul_residual_layernorm(ao, lp["wo"], lp["bo"], x2d,
                                       lp["ln1_g"], lp["ln1_b"])
        # MLP: first linear with ReLU epilogue, second fused with add + LN2
        h1 = matmul_bias(x1, lp["w1"], lp["b1"], relu=True)
        x2d = matmul_residual_layernorm(h1, lp["w2"], lp["b2"], x1,
                                        lp["ln2_g"], lp["ln2_b"])

    cls_final = x2d.reshape(B, Sp, E)[:, 0]                          # (B, E)
    logits = matmul_bias(cls_final, params["head_w"], params["head_b"])
    return logits.astype(jnp.float32)


# ---------------------------------- main -------------------------------------

if __name__ == "__main__":
    cfg = dict(
        in_channels=4,
        patch_size=4,
        emb_dim=32,
        num_heads=4,
        num_layers=2,
        forward_expansion=2,
        num_classes=10,
        img_size=16,
    )
    key = jax.random.PRNGKey(0)
    pkey, xkey = jax.random.split(key)
    # bf16 params/activations (MXU-native on v5e/v6e/v7x); accumulation,
    # LayerNorm and softmax math stay f32 inside the kernels.
    params = init_params(pkey, cfg, dtype=jnp.bfloat16)
    x = jax.random.normal(
        xkey, (2, cfg["in_channels"], cfg["img_size"], cfg["img_size"]),
        dtype=jnp.float32)

    logits = vit_forward(x, params, cfg)
    jax.block_until_ready(logits)
    assert logits.shape == (2, cfg["num_classes"])
    assert bool(jnp.all(jnp.isfinite(logits)))
    print("KERNEL_OK")
</pallas_src>

<mosaic_0001>
module attributes {stable_mosaic.version = 11 : i64} {
  func.func @_matmul_bias_kernel(%arg0: i32, %arg1: i32, %arg2: i32, %arg3: memref<32x128xbf16, #tpu.memory_space<vmem>>, %arg4: memref<128x128xbf16, #tpu.memory_space<vmem>>, %arg5: memref<1x128xbf16, #tpu.memory_space<vmem>>, %arg6: memref<32x128xbf16, #tpu.memory_space<vmem>>, %arg7: memref<32x128xf32, #tpu.memory_space<vmem>>) attributes {dimension_semantics = [#tpu.dimension_semantics<parallel>, #tpu.dimension_semantics<parallel>, #tpu.dimension_semantics<arbitrary>], iteration_bounds = array<i64: 1, 1, 1>, scalar_prefetch = 0 : i64, scratch_operands = 1 : i64, tpu.core_type = #tpu.core_type<tc>, window_params = [{transform_indices = @transform_0, window_bounds = array<i64: 32, 128>}, {transform_indices = @transform_1, window_bounds = array<i64: 128, 128>}, {transform_indices = @transform_2, window_bounds = array<i64: 1, 128>}, {transform_indices = @transform_3, window_bounds = array<i64: 32, 128>}]} {
    %c0_i32 = arith.constant 0 : i32
    %0 = arith.cmpi eq, %arg2, %c0_i32 : i32
    %1 = arith.extui %0 : i1 to i32
    %c0_i32_0 = arith.constant 0 : i32
    %2 = arith.cmpi ne, %1, %c0_i32_0 : i32
    scf.if %2 {
      %cst_10 = arith.constant 0.000000e+00 : f32
      %12 = vector.broadcast %cst_10 : f32 to vector<32x128xf32>
      %c0_11 = arith.constant 0 : index
      %c0_12 = arith.constant 0 : index
      %13 = vector.load %arg7[%c0_11, %c0_12] : memref<32x128xf32, #tpu.memory_space<vmem>>, vector<32x128xf32>
      tpu.vector_store %arg7[%c0_11, %c0_12], %12 {strides = array<i32>} : memref<32x128xf32, #tpu.memory_space<vmem>>, vector<32x128xf32>,
    } else {
    }
    %c0 = arith.constant 0 : index
    %c0_1 = arith.constant 0 : index
    %3 = vector.load %arg7[%c0, %c0_1] : memref<32x128xf32, #tpu.memory_space<vmem>>, vector<32x128xf32>
    %c0_2 = arith.constant 0 : index
    %c0_3 = arith.constant 0 : index
    %4 = vector.load %arg3[%c0_2, %c0_3] : memref<32x128xbf16, #tpu.memory_space<vmem>>, vector<32x128xbf16>
    %c0_4 = arith.constant 0 : index
    %c0_5 = arith.constant 0 : index
    %5 = vector.load %arg4[%c0_4, %c0_5] : memref<128x128xbf16, #tpu.memory_space<vmem>>, vector<128x128xbf16>
    %cst = arith.constant dense<0.000000e+00> : vector<32x128xf32>
    %6 = tpu.matmul %4, %5, %cst {dimension_numbers = #tpu.dot_dimension_numbers<[1], [0], [0], [1], [0, 0, 1, 1], [], []>} : vector<32x128xbf16>, vector<128x128xbf16>, vector<32x128xf32> -> vector<32x128xf32>
    %7 = arith.addf %3, %6 : vector<32x128xf32>
    %c0_6 = arith.constant 0 : index
    %c0_7 = arith.constant 0 : index
    %8 = vector.load %arg7[%c0_6, %c0_7] : memref<32x128xf32, #tpu.memory_space<vmem>>, vector<32x128xf32>
    tpu.vector_store %arg7[%c0_6, %c0_7], %7 {strides = array<i32>} : memref<32x128xf32, #tpu.memory_space<vmem>>, vector<32x128xf32>,
    %c0_i32_8 = arith.constant 0 : i32
    %9 = arith.cmpi eq, %arg2, %c0_i32_8 : i32
    %10 = arith.extui %9 : i1 to i32
    %c0_i32_9 = arith.constant 0 : i32
    %11 = arith.cmpi ne, %10, %c0_i32_9 : i32
    scf.if %11 {
      %c0_10 = arith.constant 0 : index
      %c0_11 = arith.constant 0 : index
      %12 = vector.load %arg7[%c0_10, %c0_11] : memref<32x128xf32, #tpu.memory_space<vmem>>, vector<32x128xf32>
      %c0_12 = arith.constant 0 : index
      %c0_13 = arith.constant 0 : index
      %13 = vector.load %arg5[%c0_12, %c0_13] : memref<1x128xbf16, #tpu.memory_space<vmem>>, vector<1x128xbf16>
      %14 = arith.extf %13 : vector<1x128xbf16> to vector<1x128xf32>
      %15 = vector.broadcast %14 : vector<1x128xf32> to vector<32x128xf32>
      %16 = arith.addf %12, %15 : vector<32x128xf32>
      %17 = arith.truncf %16 : vector<32x128xf32> to vector<32x128xbf16>
      %c0_14 = arith.constant 0 : index
      %c0_15 = arith.constant 0 : index
      %18 = vector.load %arg6[%c0_14, %c0_15] : memref<32x128xbf16, #tpu.memory_space<vmem>>, vector<32x128xbf16>
      tpu.vector_store %arg6[%c0_14, %c0_15], %17 {strides = array<i32>} : memref<32x128xbf16, #tpu.memory_space<vmem>>, vector<32x128xbf16>,
    } else {
    }
    return
  }
  func.func @transform_0(%arg0: i32, %arg1: i32, %arg2: i32) -> (i32, i32) {
    %c0_i32 = arith.constant 0 : i32
    return %arg0, %arg2 : i32, i32
  }
  func.func @transform_1(%arg0: i32, %arg1: i32, %arg2: i32) -> (i32, i32) {
    %c0_i32 = arith.constant 0 : i32
    return %arg2, %arg1 : i32, i32
  }
  func.func @transform_2(%arg0: i32, %arg1: i32, %arg2: i32) -> (i32, i32) {
    %c0_i32 = arith.constant 0 : i32
    %c0_i32_0 = arith.constant 0 : i32
    return %c0_i32, %arg1 : i32, i32
  }
  func.func @transform_3(%arg0: i32, %arg1: i32, %arg2: i32) -> (i32, i32) {
    %c0_i32 = arith.constant 0 : i32
    return %arg0, %arg1 : i32, i32
  }
}

</mosaic_0001>

<bundles_post_ra>
// kernel: tpu_custom_call.1
= control target key start
LH: loop header
LB: loop body
LE: loop exit
PB: predicated region body
PF: predicated region fallthrough
CT: control target
= control target key end

     0   :  { %8 = vsyncpa [#allocation4], 0  ;;  %s467_s0 = inlined_call_operand.hbm [shape: bf16[32,128], index: 0, kind: input, shape index: {}]   ;;  %s468_s1 = inlined_call_operand.hbm [shape: bf16[128,128], index: 1, kind: input, shape index: {}]   ;;  %s469_s2 = inlined_call_operand.vmem [shape: bf16[1,128], index: 2, kind: input, shape index: {}]   ;;  %s470_s3 = inlined_call_operand.hbm [shape: bf16[32,128], index: 3, kind: output, shape index: {}]  }
   0x1   :  { %9 = vsyncpa [#allocation7], 0 }
   0x2   :  { %10 = vsyncpa [#allocation5], 0  ;;  %s394_s12 = smov [#allocation3]   ;;  %s322_s16 = scalar_lea.hbm %s467_s0, 256 }
   0x3   :  { %s16_s13 = sshll.u32 %s394_s12, 4  ;;  %p323_p0 = scmp.ne.s32.totalorder %s467_s0, %s322_s16  ;;  %s17_s13 = int_to_ptr.vmem [resolvable:$true] %s16_s13 }
   0x4   :  { %p326_p1 = scmp.lt.u32.totalorder %s322_s16, %s467_s0 }
   0x6   :  { %p328_p2 = pnand %p326_p1, %p323_p0 }
   0x8   :  { %331 = shalt.err (!%p328_p2)
}
   0x9   :  { %s332_s21 = scalar_lea.vmem %s17_s13, 256  ;;  %p337_p4 = scmp.lt.s32.totalorder %s17_s13, %s17_s13 }
   0xa   :  { %p333_p3 = scmp.ne.s32.totalorder %s17_s13, %s332_s21  ;;  %p338_p5 = scmp.lt.s32.totalorder %s332_s21, %s332_s21 }
   0xc   :  { %p339_p6 = por %p338_p5, %p337_p4 }
   0xe   :  { %p340_p7 = pnand %p339_p6, %p333_p3 }
  0x10   :  { %343 = shalt.err (!%p340_p7)
}
  0x11   :  { %s395_s22 = smov 64   ;;  %s396_s23 = smov 4  }
  0x12   :  { %22 = dma.hbm_to_vmem [thread:$0]  %s467_s0, 256, %s17_s13, [#allocation4], %s395_s22, %s395_s22, %s396_s23  }
  0x13   :  { %s397_s26 = smov [#allocation6]   ;;  %s344_s30 = scalar_lea.hbm %s468_s1, 1024 }
  0x14   :  { %s28_s27 = sshll.u32 %s397_s26, 4  ;;  %p345_p8 = scmp.ne.s32.totalorder %s468_s1, %s344_s30  ;;  %s29_s27 = int_to_ptr.vmem [resolvable:$true] %s28_s27 }
  0x15   :  { %p348_p9 = scmp.lt.u32.totalorder %s344_s30, %s468_s1 }
  0x17   :  { %p350_p10 = pnand %p348_p9, %p345_p8 }
  0x19   :  { %353 = shalt.err (!%p350_p10)
}
  0x1a   :  { %s354_s8 = scalar_lea.vmem %s29_s27, 1024  ;;  %p359_p12 = scmp.lt.s32.totalorder %s29_s27, %s29_s27 }
  0x1b   :  { %p355_p11 = scmp.ne.s32.totalorder %s29_s27, %s354_s8  ;;  %p360_p13 = scmp.lt.s32.totalorder %s354_s8, %s354_s8 }
  0x1d   :  { %p361_p0 = por %p360_p13, %p359_p12 }
  0x1f   :  { %p362_p1 = pnand %p361_p0, %p355_p11 }
  0x21   :  { %365 = shalt.err (!%p362_p1)
}
  0x22   :  { %34 = dma.hbm_to_vmem [thread:$0]  %s468_s1, 1024, %s29_s27, [#allocation7], %s395_s22, %s395_s22, %s396_s23  }
  0x23   :  { %388 = dma.done.wait [#allocation4], 256  }
  0x24   :  { %389 = vsyncadd [#allocation4], 4294967040 }
  0x25   :  { %390 = dma.done.wait [#allocation7], 1024  }
  0x26   :  { %391 = vsyncadd [#allocation7], 4294966272  ;;  %v312_v0 = vld [vmem:[#allocation6] sm:$0xff]   ;;  %v313_v1 = vld [vmem:[#allocation6 + $0x8] sm:$0xff]   ;;  %v202_v10 = vlaneseq  ;;  %s398_s11 = smov [#allocation8]  }
  0x27   :  { %287 = vmatprep.subr.bf16.mxu0 %v312_v0  ;;  %v314_v2 = vld [vmem:[#allocation6 + $0x10] sm:$0xff]   ;;  %v315_v3 = vld [vmem:[#allocation6 + $0x18] sm:$0xff]   ;;  %v316_v5 = vld [vmem:[#allocation6 + $0x20] sm:$0xff]   ;;  %s235_s12 = sshll.u32 %s398_s11, 4  ;;  %s236_s12 = int_to_ptr.vmem [resolvable:$true] %s235_s12 }
  0x28   :  { %288 = vmatpush3.bf16.msra.mxu0 %v312_v0  ;;  %v320_v4 = vld [vmem:[#allocation3] sm:$0xff]   ;;  %v317_v6 = vld [vmem:[#allocation6 + $0x28] sm:$0xff]   ;;  %v319_v8 = vld [vmem:[#allocation6 + $0x38] sm:$0xff]   ;;  %v203_v11 = vshrl.u32 %v202_v10, 7  ;;  %s366_s13 = scalar_lea.vmem %s236_s12, 256  ;;  %p371_p3 = scmp.lt.s32.totalorder %s236_s12, %s236_s12 }
  0x29   :  { %289 = vmatprep.subr.bf16.mxu0 %v313_v1  ;;  %303 = vmatprep.mubr.bf16.mxu0 %v320_v4  ;;  %v318_v7 = vld [vmem:[#allocation6 + $0x30] sm:$0xff]   ;;  %v321_v9 = vld [vmem:[#allocation3 + $0x8] sm:$0xff]   ;;  %p367_p2 = scmp.ne.s32.totalorder %s236_s12, %s366_s13  ;;  %p372_p4 = scmp.lt.s32.totalorder %s366_s13, %s366_s13 }
  0x2a   :  { %v200_v12 = vld [vmem:[%s469_s2] sm:$0x1]  ;;  %v204_v14 = vsub.s32 0, %v203_v11 }
  0x2b   :  { %v201_v13 = vunpack.c.l.bf16 %v200_v12  ;;  %p373_p5 = por %p372_p4, %p371_p3 }
  0x2c   :  { %290 = vmatpush3.bf16.msra.mxu0 %v313_v1 }
  0x2d   :  { %291 = vmatprep.subr.bf16.mxu0 %v314_v2  ;;  %v205_v15 = vrot.slane %v201_v13, %v204_v14  ;;  %p374_p6 = pnand %p373_p5, %p367_p2 }
  0x30   :  { %292 = vmatpush3.bf16.msra.mxu0 %v314_v2 }
  0x31   :  { %293 = vmatprep.subr.bf16.mxu0 %v315_v3 }
  0x34   :  { %294 = vmatpush3.bf16.msra.mxu0 %v315_v3 }
  0x35   :  { %295 = vmatprep.subr.bf16.mxu0 %v316_v5 }
  0x38   :  { %296 = vmatpush3.bf16.msra.mxu0 %v316_v5 }
  0x39   :  { %297 = vmatprep.subr.bf16.mxu0 %v317_v6 }
  0x3c   :  { %298 = vmatpush3.bf16.msra.mxu0 %v317_v6 }
  0x3d   :  { %299 = vmatprep.subr.bf16.mxu0 %v318_v7 }
  0x40   :  { %300 = vmatpush3.bf16.msra.mxu0 %v318_v7 }
  0x41   :  { %301 = vmatprep.subr.bf16.mxu0 %v319_v8 }
  0x44   :  { %302 = vmatpush3.bf16.msra.mxu0 %v319_v8 }
  0x47   :  { %304 = vmatmul.mubr.bf16.vlgmr.msra.gmra.mrb[0].mxu0 %v321_v9 }
 0x11a   :  { %v305_v16 = vpop.f32.mrb[0].mxu0 }
 0x11b   :  { %v170_v17 = vpop.f32.mrb[1].mxu0  ;;  %v208_v19 = vadd.f32 %v305_v16, %v205_v15 }
 0x11c   :  { %v306_v18 = vpop.f32.mrb[2].mxu0  ;;  %v206_v22 = vadd.f32 %v205_v15, %v170_v17 }
 0x11d   :  { %v209_v20 = vadd.f32 %v306_v18, %v205_v15  ;;  %v173_v21 = vpop.f32.mrb[3].mxu0 }
 0x11e   :  { %v207_v23 = vadd.f32 %v205_v15, %v173_v21 }
 0x11f   :  { %v274_v24 = vpack.c.bf16 %v209_v20, %v208_v19 }
 0x120   :  { %v269_v25 = vpack.c.bf16 %v207_v23, %v206_v22 }
 0x121   :  { %276 = vst [vmem:[#allocation8 + $0x8] sm:$0xff] %v274_v24  }
 0x122   :  { %270 = vst [vmem:[#allocation8] sm:$0xff] %v269_v25  }
 0x123   :  { %377 = shalt.err (!%p374_p6)
}
 0x124   :  { %s378_s15 = scalar_lea.hbm %s470_s3, 256 }
 0x125   :  { %p379_p7 = scmp.ne.s32.totalorder %s470_s3, %s378_s15  ;;  %p382_p8 = scmp.lt.u32.totalorder %s378_s15, %s470_s3 }
 0x127   :  { %p384_p9 = pnand %p382_p8, %p379_p7 }
 0x129   :  { %387 = shalt.err (!%p384_p9)
}
 0x12a   :  { %241 = dma.vmem_to_hbm [thread:$0]  %s236_s12, 256, %s470_s3, [#allocation5], %s395_s22, %s395_s22, %s396_s23  }
 0x12b   :  { %392 = dma.done.wait [#allocation5], 256  }
 0x12c   :  { %393 = vsyncadd [#allocation5], 4294967040 }
 0x12d   :  { %245 = vsyncpa [#allocation4], 1 }
 0x12e   :  { %246 = vsyncpa [#allocation7], 1 }
 0x12f   :  { %247 = vsyncpa [#allocation5], 1 }

</bundles_post_ra>
